<compile_context>
chip_gen: v5e
topology: v5e:2x2
jax: 0.10.0
libtpu: 0.0.40
codegen_flags: <defaults>
</compile_context>

<pallas_src>
import functools

import jax
import jax.numpy as jnp
import numpy as np
from jax.experimental import pallas as pl
from jax.experimental.pallas import tpu as pltpu

# ---------------- module hyperparameters (small, consistent with the module) ----
B = 2              # batch
N = 8              # tokens (extra leading dim; LayerNorm/Linear act on last dim)
D = 32             # input_dim == hidden_dim == output_dim (required by the module)
NUM_LAYERS = 3     # num_hidden_layers
LN_EPS = 1e-5      # torch.nn.LayerNorm default eps

TILE_ROWS_MAX = 512   # row tile for the auto-pipelined grid once B*N grows


def resmlp_kernel(x_ref, w_ref, v_ref, o_ref, *, num_layers, d):
    """x_ref: (tile_rows, D) activation tile.
    w_ref: (L, D, D) weights, pre-transposed so the kernel does x @ w.
    v_ref: (3*L, D) packed per-layer vectors, rows [bias_l, gamma_l, beta_l].
    o_ref: (tile_rows, D) output tile."""
    x = x_ref[...]                                    # (R, D) f32
    z = x
    inv_d = jnp.float32(1.0 / d)
    for l in range(num_layers):
        # Linear (weight pre-transposed at param-load time -> plain x @ w)
        z = jnp.dot(z, w_ref[l], preferred_element_type=jnp.float32)
        z = z + v_ref[3 * l + 0:3 * l + 1, :]         # bias, (1, D) broadcast
        # LayerNorm: two independent reductions, var = E[z^2] - mu^2 (+ eps)
        s1 = jnp.sum(z, axis=-1, keepdims=True)
        s2 = jnp.sum(z * z, axis=-1, keepdims=True)
        mu = s1 * inv_d
        var = s2 * inv_d - mu * mu
        z = (z - mu) * jax.lax.rsqrt(var + LN_EPS)
        z = z * v_ref[3 * l + 1:3 * l + 2, :] + v_ref[3 * l + 2:3 * l + 3, :]
        # ReLU
        z = jnp.maximum(z, jnp.float32(0.0))
        # Dropout(p=0.0) / eval mode -> identity (nothing to emit)
    # residual skip
    o_ref[...] = x + z


def prepare_params(params):
    """One-time parameter preparation (call at param-load time, NOT per step):
    pre-transpose torch-layout (out, in) weights and pack per-layer vectors."""
    w_t = jnp.transpose(params["w"], (0, 2, 1))                       # (L, D, D)
    vecs = jnp.stack(
        [params["b"], params["gamma"], params["beta"]], axis=1        # (L, 3, D)
    ).reshape(3 * NUM_LAYERS, D)                                      # (3L, D)
    return w_t, vecs


@jax.jit
def residual_mlp_block(x, w_t, vecs):
    """x: (B, N, D) f32, w_t: (L, D, D), vecs: (3L, D) -> (B, N, D) f32."""
    b, n, d = x.shape
    bn = b * n

    # Flatten (B, N) -> one lane-dense 2-D slab.
    x2d = x.reshape(bn, d)

    # Row tiling: single step at toy size, 512-row tiles (double-buffered) at scale.
    if bn <= TILE_ROWS_MAX:
        tile_rows, bn_pad = bn, bn
    else:
        tile_rows = TILE_ROWS_MAX
        bn_pad = pl.cdiv(bn, tile_rows) * tile_rows
    if bn_pad != bn:
        x2d = jnp.pad(x2d, ((0, bn_pad - bn), (0, 0)))
    grid = (bn_pad // tile_rows,)

    kernel = functools.partial(resmlp_kernel, num_layers=NUM_LAYERS, d=d)

    out2d = pl.pallas_call(
        kernel,
        out_shape=jax.ShapeDtypeStruct((bn_pad, d), jnp.float32),
        grid=grid,
        in_specs=[
            # Activations: tiled over rows, auto-pipelined.
            pl.BlockSpec((tile_rows, d), lambda i: (i, 0)),
            # Weights + packed vectors: constant index_map -> DMA'd once,
            # VMEM-resident across all grid steps (only ~13 KiB total).
            pl.BlockSpec((NUM_LAYERS, d, d), lambda i: (0, 0, 0)),
            pl.BlockSpec((3 * NUM_LAYERS, d), lambda i: (0, 0)),
        ],
        out_specs=pl.BlockSpec((tile_rows, d), lambda i: (i, 0)),
        compiler_params=pltpu.CompilerParams(
            # Row tiles are independent -> shard across v7x's two TensorCores;
            # harmless on v5e/v6e (single TC).
            dimension_semantics=("parallel",),
        ),
    )(x2d, w_t, vecs)

    if bn_pad != bn:
        out2d = out2d[:bn]
    return out2d.reshape(b, n, d)


# ---------------- pure-JAX reference (mirrors the PyTorch forward) --------------
def reference(x, p):
    z = x
    for l in range(NUM_LAYERS):
        z = z @ p["w"][l].T + p["b"][l]
        mu = jnp.mean(z, axis=-1, keepdims=True)
        var = jnp.mean((z - mu) ** 2, axis=-1, keepdims=True)
        z = (z - mu) / jnp.sqrt(var + LN_EPS)
        z = z * p["gamma"][l] + p["beta"][l]
        z = jnp.maximum(z, 0.0)
    return x + z


def init_params(key):
    ks = jax.random.split(key, 4)
    s = 0.1
    return {
        "w": s * jax.random.normal(ks[0], (NUM_LAYERS, D, D), jnp.float32),   # torch (out, in)
        "b": s * jax.random.normal(ks[1], (NUM_LAYERS, D), jnp.float32),
        "gamma": 1.0 + s * jax.random.normal(ks[2], (NUM_LAYERS, D), jnp.float32),
        "beta": s * jax.random.normal(ks[3], (NUM_LAYERS, D), jnp.float32),
    }


if __name__ == "__main__":
    key = jax.random.PRNGKey(0)
    kx, kp = jax.random.split(key)
    x = jax.random.normal(kx, (B, N, D), jnp.float32)
    params = init_params(kp)

    # One-time parameter prep (outside the hot path).
    w_t, vecs = prepare_params(params)
    w_t, vecs = jax.block_until_ready((w_t, vecs))

    out = jax.block_until_ready(residual_mlp_block(x, w_t, vecs))
    ref = jax.block_until_ready(reference(x, params))
    np.testing.assert_allclose(np.asarray(out), np.asarray(ref), rtol=1e-4, atol=1e-4)

    print("KERNEL_OK")
</pallas_src>

<mosaic_0001>
module attributes {stable_mosaic.version = 11 : i64} {
  func.func @resmlp_kernel(%arg0: i32, %arg1: memref<16x32xf32, #tpu.memory_space<vmem>>, %arg2: memref<3x32x32xf32, #tpu.memory_space<vmem>>, %arg3: memref<9x32xf32, #tpu.memory_space<vmem>>, %arg4: memref<16x32xf32, #tpu.memory_space<vmem>>) attributes {dimension_semantics = [#tpu.dimension_semantics<parallel>], iteration_bounds = array<i64: 1>, scalar_prefetch = 0 : i64, scratch_operands = 0 : i64, tpu.core_type = #tpu.core_type<tc>, window_params = [{transform_indices = @transform_0, window_bounds = array<i64: 16, 32>}, {pipeline_mode = #tpu.pipeline_mode<synchronous>, transform_indices = @transform_1, window_bounds = array<i64: 3, 32, 32>}, {pipeline_mode = #tpu.pipeline_mode<synchronous>, transform_indices = @transform_2, window_bounds = array<i64: 9, 32>}, {transform_indices = @transform_3, window_bounds = array<i64: 16, 32>}]} {
    %c0 = arith.constant 0 : index
    %c0_0 = arith.constant 0 : index
    %0 = vector.load %arg1[%c0, %c0_0] : memref<16x32xf32, #tpu.memory_space<vmem>>, vector<16x32xf32>
    %c0_1 = arith.constant 0 : index
    %c0_2 = arith.constant 0 : index
    %c0_3 = arith.constant 0 : index
    %1 = vector.load %arg2[%c0_1, %c0_2, %c0_3] : memref<3x32x32xf32, #tpu.memory_space<vmem>>, vector<1x32x32xf32>
    %2 = vector.shape_cast %1 : vector<1x32x32xf32> to vector<32x32xf32>
    %cst = arith.constant dense<0.000000e+00> : vector<16x32xf32>
    %3 = tpu.matmul %0, %2, %cst {dimension_numbers = #tpu.dot_dimension_numbers<[1], [0], [0], [1], [0, 0, 1, 1], [], []>} : vector<16x32xf32>, vector<32x32xf32>, vector<16x32xf32> -> vector<16x32xf32>
    %c0_4 = arith.constant 0 : index
    %c0_5 = arith.constant 0 : index
    %4 = vector.load %arg3[%c0_4, %c0_5] : memref<9x32xf32, #tpu.memory_space<vmem>>, vector<1x32xf32>
    %5 = vector.broadcast %4 : vector<1x32xf32> to vector<16x32xf32>
    %6 = arith.addf %3, %5 : vector<16x32xf32>
    %cst_6 = arith.constant dense<0.000000e+00> : vector<16xf32>
    %7 = vector.multi_reduction <add>, %6, %cst_6 [1] : vector<16x32xf32> to vector<16xf32>
    %8 = vector.shape_cast %7 : vector<16xf32> to vector<16x1xf32>
    %9 = arith.mulf %6, %6 : vector<16x32xf32>
    %cst_7 = arith.constant dense<0.000000e+00> : vector<16xf32>
    %10 = vector.multi_reduction <add>, %9, %cst_7 [1] : vector<16x32xf32> to vector<16xf32>
    %11 = vector.shape_cast %10 : vector<16xf32> to vector<16x1xf32>
    %cst_8 = arith.constant 3.125000e-02 : f32
    %12 = vector.broadcast %cst_8 : f32 to vector<16x1xf32>
    %13 = arith.mulf %8, %12 : vector<16x1xf32>
    %cst_9 = arith.constant 3.125000e-02 : f32
    %14 = vector.broadcast %cst_9 : f32 to vector<16x1xf32>
    %15 = arith.mulf %11, %14 : vector<16x1xf32>
    %16 = arith.mulf %13, %13 : vector<16x1xf32>
    %17 = arith.subf %15, %16 : vector<16x1xf32>
    %18 = vector.broadcast %13 : vector<16x1xf32> to vector<16x32xf32>
    %19 = arith.subf %6, %18 : vector<16x32xf32>
    %cst_10 = arith.constant 9.99999974E-6 : f32
    %20 = vector.broadcast %cst_10 : f32 to vector<16x1xf32>
    %21 = arith.addf %17, %20 : vector<16x1xf32>
    %22 = math.rsqrt %21 : vector<16x1xf32>
    %23 = vector.broadcast %22 : vector<16x1xf32> to vector<16x32xf32>
    %24 = arith.mulf %19, %23 : vector<16x32xf32>
    %c1 = arith.constant 1 : index
    %c0_11 = arith.constant 0 : index
    %25 = vector.load %arg3[%c1, %c0_11] : memref<9x32xf32, #tpu.memory_space<vmem>>, vector<1x32xf32>
    %26 = vector.broadcast %25 : vector<1x32xf32> to vector<16x32xf32>
    %27 = arith.mulf %24, %26 : vector<16x32xf32>
    %c2 = arith.constant 2 : index
    %c0_12 = arith.constant 0 : index
    %28 = vector.load %arg3[%c2, %c0_12] : memref<9x32xf32, #tpu.memory_space<vmem>>, vector<1x32xf32>
    %29 = vector.broadcast %28 : vector<1x32xf32> to vector<16x32xf32>
    %30 = arith.addf %27, %29 : vector<16x32xf32>
    %cst_13 = arith.constant 0.000000e+00 : f32
    %31 = vector.broadcast %cst_13 : f32 to vector<16x32xf32>
    %32 = arith.maximumf %30, %31 : vector<16x32xf32>
    %c1_14 = arith.constant 1 : index
    %c0_15 = arith.constant 0 : index
    %c0_16 = arith.constant 0 : index
    %33 = vector.load %arg2[%c1_14, %c0_15, %c0_16] : memref<3x32x32xf32, #tpu.memory_space<vmem>>, vector<1x32x32xf32>
    %34 = vector.shape_cast %33 : vector<1x32x32xf32> to vector<32x32xf32>
    %cst_17 = arith.constant dense<0.000000e+00> : vector<16x32xf32>
    %35 = tpu.matmul %32, %34, %cst_17 {dimension_numbers = #tpu.dot_dimension_numbers<[1], [0], [0], [1], [0, 0, 1, 1], [], []>} : vector<16x32xf32>, vector<32x32xf32>, vector<16x32xf32> -> vector<16x32xf32>
    %c3 = arith.constant 3 : index
    %c0_18 = arith.constant 0 : index
    %36 = vector.load %arg3[%c3, %c0_18] : memref<9x32xf32, #tpu.memory_space<vmem>>, vector<1x32xf32>
    %37 = vector.broadcast %36 : vector<1x32xf32> to vector<16x32xf32>
    %38 = arith.addf %35, %37 : vector<16x32xf32>
    %cst_19 = arith.constant dense<0.000000e+00> : vector<16xf32>
    %39 = vector.multi_reduction <add>, %38, %cst_19 [1] : vector<16x32xf32> to vector<16xf32>
    %40 = vector.shape_cast %39 : vector<16xf32> to vector<16x1xf32>
    %41 = arith.mulf %38, %38 : vector<16x32xf32>
    %cst_20 = arith.constant dense<0.000000e+00> : vector<16xf32>
    %42 = vector.multi_reduction <add>, %41, %cst_20 [1] : vector<16x32xf32> to vector<16xf32>
    %43 = vector.shape_cast %42 : vector<16xf32> to vector<16x1xf32>
    %cst_21 = arith.constant 3.125000e-02 : f32
    %44 = vector.broadcast %cst_21 : f32 to vector<16x1xf32>
    %45 = arith.mulf %40, %44 : vector<16x1xf32>
    %cst_22 = arith.constant 3.125000e-02 : f32
    %46 = vector.broadcast %cst_22 : f32 to vector<16x1xf32>
    %47 = arith.mulf %43, %46 : vector<16x1xf32>
    %48 = arith.mulf %45, %45 : vector<16x1xf32>
    %49 = arith.subf %47, %48 : vector<16x1xf32>
    %50 = vector.broadcast %45 : vector<16x1xf32> to vector<16x32xf32>
    %51 = arith.subf %38, %50 : vector<16x32xf32>
    %cst_23 = arith.constant 9.99999974E-6 : f32
    %52 = vector.broadcast %cst_23 : f32 to vector<16x1xf32>
    %53 = arith.addf %49, %52 : vector<16x1xf32>
    %54 = math.rsqrt %53 : vector<16x1xf32>
    %55 = vector.broadcast %54 : vector<16x1xf32> to vector<16x32xf32>
    %56 = arith.mulf %51, %55 : vector<16x32xf32>
    %c4 = arith.constant 4 : index
    %c0_24 = arith.constant 0 : index
    %57 = vector.load %arg3[%c4, %c0_24] : memref<9x32xf32, #tpu.memory_space<vmem>>, vector<1x32xf32>
    %58 = vector.broadcast %57 : vector<1x32xf32> to vector<16x32xf32>
    %59 = arith.mulf %56, %58 : vector<16x32xf32>
    %c5 = arith.constant 5 : index
    %c0_25 = arith.constant 0 : index
    %60 = vector.load %arg3[%c5, %c0_25] : memref<9x32xf32, #tpu.memory_space<vmem>>, vector<1x32xf32>
    %61 = vector.broadcast %60 : vector<1x32xf32> to vector<16x32xf32>
    %62 = arith.addf %59, %61 : vector<16x32xf32>
    %cst_26 = arith.constant 0.000000e+00 : f32
    %63 = vector.broadcast %cst_26 : f32 to vector<16x32xf32>
    %64 = arith.maximumf %62, %63 : vector<16x32xf32>
    %c2_27 = arith.constant 2 : index
    %c0_28 = arith.constant 0 : index
    %c0_29 = arith.constant 0 : index
    %65 = vector.load %arg2[%c2_27, %c0_28, %c0_29] : memref<3x32x32xf32, #tpu.memory_space<vmem>>, vector<1x32x32xf32>
    %66 = vector.shape_cast %65 : vector<1x32x32xf32> to vector<32x32xf32>
    %cst_30 = arith.constant dense<0.000000e+00> : vector<16x32xf32>
    %67 = tpu.matmul %64, %66, %cst_30 {dimension_numbers = #tpu.dot_dimension_numbers<[1], [0], [0], [1], [0, 0, 1, 1], [], []>} : vector<16x32xf32>, vector<32x32xf32>, vector<16x32xf32> -> vector<16x32xf32>
    %c6 = arith.constant 6 : index
    %c0_31 = arith.constant 0 : index
    %68 = vector.load %arg3[%c6, %c0_31] : memref<9x32xf32, #tpu.memory_space<vmem>>, vector<1x32xf32>
    %69 = vector.broadcast %68 : vector<1x32xf32> to vector<16x32xf32>
    %70 = arith.addf %67, %69 : vector<16x32xf32>
    %cst_32 = arith.constant dense<0.000000e+00> : vector<16xf32>
    %71 = vector.multi_reduction <add>, %70, %cst_32 [1] : vector<16x32xf32> to vector<16xf32>
    %72 = vector.shape_cast %71 : vector<16xf32> to vector<16x1xf32>
    %73 = arith.mulf %70, %70 : vector<16x32xf32>
    %cst_33 = arith.constant dense<0.000000e+00> : vector<16xf32>
    %74 = vector.multi_reduction <add>, %73, %cst_33 [1] : vector<16x32xf32> to vector<16xf32>
    %75 = vector.shape_cast %74 : vector<16xf32> to vector<16x1xf32>
    %cst_34 = arith.constant 3.125000e-02 : f32
    %76 = vector.broadcast %cst_34 : f32 to vector<16x1xf32>
    %77 = arith.mulf %72, %76 : vector<16x1xf32>
    %cst_35 = arith.constant 3.125000e-02 : f32
    %78 = vector.broadcast %cst_35 : f32 to vector<16x1xf32>
    %79 = arith.mulf %75, %78 : vector<16x1xf32>
    %80 = arith.mulf %77, %77 : vector<16x1xf32>
    %81 = arith.subf %79, %80 : vector<16x1xf32>
    %82 = vector.broadcast %77 : vector<16x1xf32> to vector<16x32xf32>
    %83 = arith.subf %70, %82 : vector<16x32xf32>
    %cst_36 = arith.constant 9.99999974E-6 : f32
    %84 = vector.broadcast %cst_36 : f32 to vector<16x1xf32>
    %85 = arith.addf %81, %84 : vector<16x1xf32>
    %86 = math.rsqrt %85 : vector<16x1xf32>
    %87 = vector.broadcast %86 : vector<16x1xf32> to vector<16x32xf32>
    %88 = arith.mulf %83, %87 : vector<16x32xf32>
    %c7 = arith.constant 7 : index
    %c0_37 = arith.constant 0 : index
    %89 = vector.load %arg3[%c7, %c0_37] : memref<9x32xf32, #tpu.memory_space<vmem>>, vector<1x32xf32>
    %90 = vector.broadcast %89 : vector<1x32xf32> to vector<16x32xf32>
    %91 = arith.mulf %88, %90 : vector<16x32xf32>
    %c8 = arith.constant 8 : index
    %c0_38 = arith.constant 0 : index
    %92 = vector.load %arg3[%c8, %c0_38] : memref<9x32xf32, #tpu.memory_space<vmem>>, vector<1x32xf32>
    %93 = vector.broadcast %92 : vector<1x32xf32> to vector<16x32xf32>
    %94 = arith.addf %91, %93 : vector<16x32xf32>
    %cst_39 = arith.constant 0.000000e+00 : f32
    %95 = vector.broadcast %cst_39 : f32 to vector<16x32xf32>
    %96 = arith.maximumf %94, %95 : vector<16x32xf32>
    %97 = arith.addf %0, %96 : vector<16x32xf32>
    %c0_40 = arith.constant 0 : index
    %c0_41 = arith.constant 0 : index
    %98 = vector.load %arg4[%c0_40, %c0_41] : memref<16x32xf32, #tpu.memory_space<vmem>>, vector<16x32xf32>
    tpu.vector_store %arg4[%c0_40, %c0_41], %97 {strides = array<i32>} : memref<16x32xf32, #tpu.memory_space<vmem>>, vector<16x32xf32>,
    return
  }
  func.func @transform_0(%arg0: i32) -> (i32, i32) {
    %c0_i32 = arith.constant 0 : i32
    %c0_i32_0 = arith.constant 0 : i32
    return %arg0, %c0_i32 : i32, i32
  }
  func.func @transform_1(%arg0: i32) -> (i32, i32, i32) {
    %c0_i32 = arith.constant 0 : i32
    %c0_i32_0 = arith.constant 0 : i32
    %c0_i32_1 = arith.constant 0 : i32
    %c0_i32_2 = arith.constant 0 : i32
    return %c0_i32, %c0_i32_0, %c0_i32_1 : i32, i32, i32
  }
  func.func @transform_2(%arg0: i32) -> (i32, i32) {
    %c0_i32 = arith.constant 0 : i32
    %c0_i32_0 = arith.constant 0 : i32
    %c0_i32_1 = arith.constant 0 : i32
    return %c0_i32, %c0_i32_0 : i32, i32
  }
  func.func @transform_3(%arg0: i32) -> (i32, i32) {
    %c0_i32 = arith.constant 0 : i32
    %c0_i32_0 = arith.constant 0 : i32
    return %arg0, %c0_i32 : i32, i32
  }
}

</mosaic_0001>

<bundles_post_ra>
// kernel: residual_mlp_block.1
= control target key start
LH: loop header
LB: loop body
LE: loop exit
PB: predicated region body
PF: predicated region fallthrough
CT: control target
= control target key end

     0   :  { %8 = vsyncpa [#allocation3], 0  ;;  %s587_s0 = inlined_call_operand.hbm [shape: f32[16,32], index: 0, kind: input, shape index: {}]   ;;  %s588_s1 = inlined_call_operand.hbm [shape: f32[3,32,32], index: 1, kind: input, shape index: {}]   ;;  %s589_s2 = inlined_call_operand.hbm [shape: f32[9,32], index: 2, kind: input, shape index: {}]   ;;  %s590_s3 = inlined_call_operand.hbm [shape: f32[16,32], index: 3, kind: output, shape index: {}]  }
   0x1   :  { %9 = vsyncpa [#allocation6], 0 }
   0x2   :  { %10 = vsyncpa [#allocation4], 0  ;;  %s28_s14 = sshll.u32 %s588_s1, 4  ;;  %s509_s15 = smov [#allocation5]   ;;  %s29_s14 = int_to_ptr.hbm [resolvable:$true] %s28_s14 }
   0x3   :  { %s30_s16 = sshll.u32 %s509_s15, 4  ;;  %s15_s19 = sshll.u32 %s587_s0, 4  ;;  %s31_s16 = int_to_ptr.vmem [resolvable:$true] %s30_s16  ;;  %s16_s19 = int_to_ptr.hbm [resolvable:$true] %s15_s19 }
   0x4   :  { %s510_s20 = smov 128   ;;  %s511_s21 = smov 8  }
   0x5   :  { %36 = dma.hbm_to_vmem [thread:$0]  %s29_s14, 1536, %s31_s16, [#allocation6], %s510_s20, %s510_s20, %s511_s21  }
   0x6   :  { %s512_s22 = smov [#allocation2]   ;;  %s41_s1 = sshll.u32 %s589_s2, 4  ;;  %s42_s1 = int_to_ptr.hbm [resolvable:$true] %s41_s1 }
   0x7   :  { %s17_s23 = sshll.u32 %s512_s22, 4  ;;  %s513_s0 = smov [#allocation7]   ;;  %s18_s23 = int_to_ptr.vmem [resolvable:$true] %s17_s23 }
   0x8   :  { %23 = dma.hbm_to_vmem [thread:$0]  %s16_s19, 256, %s18_s23, [#allocation3], %s510_s20, %s510_s20, %s511_s21  }
   0x9   :  { %s43_s26 = sshll.u32 %s513_s0, 4  ;;  %s44_s26 = int_to_ptr.vmem [resolvable:$true] %s43_s26 }
   0xa   :  { %49 = dma.hbm_to_vmem [thread:$0]  %s42_s1, 256, %s44_s26, [#allocation6], %s510_s20, %s510_s20, %s511_s21  }
   0xb   :  { %503 = dma.done.wait [#allocation3], 256  }
   0xc   :  { %504 = vsyncadd [#allocation3], 4294967040 }
   0xd   :  { %505 = dma.done.wait [#allocation6], 1792  }
   0xe   :  { %506 = vsyncadd [#allocation6], 4294965504  ;;  %v67_v0 = vld [vmem:[#allocation5 + $0x18] sm:$0xff]  ;;  %v66_v1 = vld [vmem:[#allocation5 + $0x10] sm:$0xff]  ;;  %vm70_vm0 = vcmask 261120   ;;  %s514_s2 = smov [#allocation8]  }
   0xf   :  { %89 = vmatpush.msra.mxu0 %v67_v0  ;;  %376 = vmatpush.msra.mxu3 %v67_v0  ;;  %v65_v2 = vld [vmem:[#allocation5 + $0x8] sm:$0xff]  ;;  %v64_v3 = vld [vmem:[#allocation5] sm:$0xff]  ;;  %v553_v4 = vld [vmem:[#allocation2] sm:$0xff]  ;;  %s354_s27 = sshll.u32 %s514_s2, 4  ;;  %s356_s30 = sshll.u32 %s590_s3, 4  ;;  %s355_s27 = int_to_ptr.vmem [resolvable:$true] %s354_s27  ;;  %s357_s30 = int_to_ptr.hbm [resolvable:$true] %s356_s30 }
  0x10   :  { %v555_v5 = vld [vmem:[#allocation2 + $0x8] sm:$0xff]  ;;  %v386_v6 = vld [vmem:[#allocation7] ss:$0 sm:$0xff]  ;;  %v161_v19 = vld [vmem:[#allocation5 + $0x30] sm:$0xff] }
  0x11   :  { %90 = vmatpush.msra.mxu0 %v66_v1  ;;  %377 = vmatpush.msra.mxu3 %v66_v1  ;;  %v162_v18 = vld [vmem:[#allocation5 + $0x38] sm:$0xff]  ;;  %v160_v20 = vld [vmem:[#allocation5 + $0x28] sm:$0xff]  ;;  %v159_v22 = vld [vmem:[#allocation5 + $0x20] sm:$0xff] }
  0x12   :  { %183 = vmatpush.msra.mxu1 %v162_v18  ;;  %v387_v45 = vld [vmem:[#allocation7 + $0x1] ss:$0 sm:$0xff]  ;;  %v388_v49 = vld [vmem:[#allocation7 + $0x2] ss:$0 sm:$0xff]  ;;  %v389_v61 = vld [vmem:[#allocation7 + $0x3] ss:$0 sm:$0xff] }
  0x13   :  { %91 = vmatpush.msra.mxu0 %v65_v2  ;;  %378 = vmatpush.msra.mxu3 %v65_v2 }
  0x14   :  { %184 = vmatpush.msra.mxu1 %v161_v19 }
  0x15   :  { %92 = vmatpush.msra.mxu0 %v64_v3  ;;  %379 = vmatpush.msra.mxu3 %v64_v3 }
  0x16   :  { %370 = vmatmul.msk.f32.vlgmr.msra.gmra.mxu0 %vm70_vm0, %v553_v4  ;;  %371 = vmatmul.msk.f32.vlgmr.msra.gmra.mxu3 %vm70_vm0, %v555_v5 }
  0x17   :  { %185 = vmatpush.msra.mxu1 %v160_v20 }
  0x19   :  { %186 = vmatpush.msra.mxu1 %v159_v22 }
  0x93   :  { %v94_v7 = vpop.f32.mrf.mxu0 }
  0x94   :  { %v95_v8 = vadd.f32 %v386_v6, %v94_v7 }
  0x96   :  { %v100_v9 = vsel %vm70_vm0, %v95_v8, 0.0  ;;  %v106_v12 = vmul.f32 %v95_v8, %v95_v8 }
  0x97   :  { %101 = vadd.xlane.f32.xlu0 %v100_v9 }
  0x98   :  { %v108_v14 = vsel %vm70_vm0, %v106_v12, 0.0  ;;  %v255_v12 = vld [vmem:[#allocation5 + $0x50] sm:$0xff] }
  0x99   :  { %v97_v10 = vpop.f32.mrf.mxu3 }
  0x9a   :  { %v98_v11 = vadd.f32 %v386_v6, %v97_v10 }
  0x9c   :  { %v103_v13 = vsel %vm70_vm0, %v98_v11, 0.0  ;;  %v107_v15 = vmul.f32 %v98_v11, %v98_v11 }
  0x9d   :  { %104 = vadd.xlane.f32.xlu1 %v103_v13  ;;  %v254_v13 = vld [vmem:[#allocation5 + $0x48] sm:$0xff] }
  0x9e   :  { %v111_v16 = vsel %vm70_vm0, %v107_v15, 0.0 }
  0x9f   :  { %109 = vadd.xlane.f32.xlu0 %v108_v14  ;;  %v253_v14 = vld [vmem:[#allocation5 + $0x40] sm:$0xff] }
  0xa5   :  { %112 = vadd.xlane.f32.xlu1 %v111_v16 }
 0x10a   :  { %v102_v17 = vpop.xlane.xlu0 %101 }
 0x10b   :  { %v114_v21 = vmul.f32 0.03125, %v102_v17 }
 0x10d   :  { %v118_v25 = vmul.f32 %v114_v21, %v114_v21  ;;  %v122_v44 = vsub.f32 %v95_v8, %v114_v21 }
 0x110   :  { %v105_v23 = vpop.xlane.xlu1 %104 }
 0x111   :  { %v115_v27 = vmul.f32 0.03125, %v105_v23 }
 0x112   :  { %v110_v24 = vpop.xlane.xlu0 %109 }
 0x113   :  { %v116_v26 = vmul.f32 0.03125, %v110_v24  ;;  %v119_v29 = vmul.f32 %v115_v27, %v115_v27  ;;  %v123_v53 = vsub.f32 %v98_v11, %v115_v27  ;;  %v256_v11 = vld [vmem:[#allocation5 + $0x58] sm:$0xff] }
 0x114   :  { %277 = vmatpush.msra.mxu2 %v256_v11 }
 0x115   :  { %v120_v28 = vsub.f32 %v116_v26, %v118_v25 }
 0x116   :  { %278 = vmatpush.msra.mxu2 %v255_v12 }
 0x117   :  { %v124_v30 = vadd.f32 1e-05, %v120_v28 }
 0x118   :  { %v113_v31 = vpop.xlane.xlu1 %112  ;;  %279 = vmatpush.msra.mxu2 %v254_v13 }
 0x119   :  { %395 = vrsqrt.f32 %v124_v30  ;;  %v117_v32 = vmul.f32 0.03125, %v113_v31  ;;  %vm132_vm2 = vweird.f32 %v124_v30 }
 0x11a   :  { %280 = vmatpush.msra.mxu2 %v253_v14 }
 0x11b   :  { %v121_v33 = vsub.f32 %v117_v32, %v119_v29 }
 0x11d   :  { %v125_v34 = vadd.f32 1e-05, %v121_v33 }
 0x11f   :  { %v396_v35 = vpop.eup %395  ;;  %397 = vrsqrt.f32 %v125_v34  ;;  %vm142_vm5 = vweird.f32 %v125_v34 }
 0x120   :  { %v127_v36 = vmul.f32 %v396_v35, %v124_v30  ;;  %vm133_vm1 = vweird.f32 %v396_v35 }
 0x121   :  { %vm134_vm3 = vmor %vm132_vm2, %vm133_vm1 }
 0x122   :  { %v128_v37 = vmul.f32 %v396_v35, %v127_v36 }
 0x124   :  { %v129_v38 = vmul.f32 0.5, %v128_v37 }
 0x125   :  { %v398_v39 = vpop.eup %397 }
 0x126   :  { %v130_v40 = vsub.f32 1.5, %v129_v38  ;;  %v137_v41 = vmul.f32 %v398_v39, %v125_v34  ;;  %vm143_vm4 = vweird.f32 %v398_v39 }
 0x127   :  { %vm144_vm6 = vmor %vm142_vm5, %vm143_vm4 }
 0x128   :  { %v131_v42 = vmul.f32 %v396_v35, %v130_v40  ;;  %v138_v43 = vmul.f32 %v398_v39, %v137_v41  ;;  %v390_v40 = vld [vmem:[#allocation7 + $0x4] ss:$0 sm:$0xff] }
 0x12a   :  { %v139_v46 = vmul.f32 0.5, %v138_v43  ;;  %v135_v47 = vsel %vm134_vm3, %v396_v35, %v131_v42 }
 0x12b   :  { %v146_v48 = vmul.f32 %v135_v47, %v122_v44 }
 0x12c   :  { %v140_v50 = vsub.f32 1.5, %v139_v46 }
 0x12d   :  { %v150_v51 = vmul.f32 %v387_v45, %v146_v48 }
 0x12e   :  { %v141_v52 = vmul.f32 %v398_v39, %v140_v50 }
 0x12f   :  { %v154_v54 = vadd.f32 %v388_v49, %v150_v51 }
 0x130   :  { %v145_v55 = vsel %vm144_vm6, %v398_v39, %v141_v52 }
 0x131   :  { %v156_v56 = vmax.f32 %v154_v54, 0.0  ;;  %v147_v57 = vmul.f32 %v145_v55, %v123_v53  ;;  %v392_v54 = vld [vmem:[#allocation7 + $0x6] ss:$0 sm:$0xff] }
 0x133   :  { %372 = vmatmul.msk.f32.vlgmr.msra.gmra.mxu1 %vm70_vm0, %v156_v56  ;;  %v151_v58 = vmul.f32 %v387_v45, %v147_v57  ;;  %v391_v45 = vld [vmem:[#allocation7 + $0x5] ss:$0 sm:$0xff] }
 0x135   :  { %v155_v59 = vadd.f32 %v388_v49, %v151_v58 }
 0x137   :  { %v157_v60 = vmax.f32 %v155_v59, 0.0 }
 0x13b   :  { %373 = vmatmul.msk.f32.gmra.mxu1 %vm70_vm0, %v157_v60 }
 0x1b0   :  { %v188_v62 = vpop.f32.mrf.mxu1 }
 0x1b1   :  { %v189_v63 = vadd.f32 %v389_v61, %v188_v62 }
 0x1b3   :  { %v194_v0 = vsel %vm70_vm0, %v189_v63, 0.0  ;;  %v200_v1 = vmul.f32 %v189_v63, %v189_v63 }
 0x1b4   :  { %195 = vadd.xlane.f32.xlu2 %v194_v0 }
 0x1b5   :  { %v202_v7 = vsel %vm70_vm0, %v200_v1, 0.0 }
 0x1b8   :  { %v191_v2 = vpop.f32.mrf.mxu1 }
 0x1b9   :  { %v192_v3 = vadd.f32 %v389_v61, %v191_v2 }
 0x1bb   :  { %v197_v6 = vsel %vm70_vm0, %v192_v3, 0.0  ;;  %v201_v8 = vmul.f32 %v192_v3, %v192_v3 }
 0x1bc   :  { %198 = vadd.xlane.f32.xlu0 %v197_v6  ;;  %203 = vadd.xlane.f32.xlu2 %v202_v7 }
 0x1bd   :  { %v205_v9 = vsel %vm70_vm0, %v201_v8, 0.0 }
 0x1be   :  { %206 = vadd.xlane.f32.xlu1 %v205_v9 }
 0x227   :  { %v196_v10 = vpop.xlane.xlu2 %195 }
 0x228   :  { %v208_v15 = vmul.f32 0.03125, %v196_v10 }
 0x22a   :  { %v212_v18 = vmul.f32 %v208_v15, %v208_v15  ;;  %v216_v39 = vsub.f32 %v189_v63, %v208_v15 }
 0x22f   :  { %v199_v16 = vpop.xlane.xlu0 %198  ;;  %v204_v17 = vpop.xlane.xlu2 %203 }
 0x230   :  { %v209_v19 = vmul.f32 0.03125, %v199_v16  ;;  %v210_v20 = vmul.f32 0.03125, %v204_v17 }
 0x231   :  { %v207_v21 = vpop.xlane.xlu1 %206 }
 0x232   :  { %v213_v22 = vmul.f32 %v209_v19, %v209_v19  ;;  %v214_v23 = vsub.f32 %v210_v20, %v212_v18  ;;  %v211_v24 = vmul.f32 0.03125, %v207_v21  ;;  %v217_v43 = vsub.f32 %v192_v3, %v209_v19 }
 0x234   :  { %v218_v25 = vadd.f32 1e-05, %v214_v23  ;;  %v215_v26 = vsub.f32 %v211_v24, %v213_v22 }
 0x236   :  { %399 = vrsqrt.f32 %v218_v25  ;;  %v219_v27 = vadd.f32 1e-05, %v215_v26  ;;  %vm226_vm8 = vweird.f32 %v218_v25  ;;  %v393_v26 = vld [vmem:[#allocation7 + $0x7] ss:$0 sm:$0xff] }
 0x238   :  { %401 = vrsqrt.f32 %v219_v27  ;;  %vm236_vm11 = vweird.f32 %v219_v27 }
 0x23c   :  { %v400_v28 = vpop.eup %399 }
 0x23d   :  { %v221_v29 = vmul.f32 %v400_v28, %v218_v25  ;;  %vm227_vm7 = vweird.f32 %v400_v28 }
 0x23e   :  { %v402_v30 = vpop.eup %401  ;;  %vm228_vm10 = vmor %vm226_vm8, %vm227_vm7 }
 0x23f   :  { %v222_v31 = vmul.f32 %v400_v28, %v221_v29  ;;  %v231_v32 = vmul.f32 %v402_v30, %v219_v27  ;;  %vm237_vm9 = vweird.f32 %v402_v30 }
 0x240   :  { %vm238_vm12 = vmor %vm236_vm11, %vm237_vm9 }
 0x241   :  { %v223_v33 = vmul.f32 0.5, %v222_v31  ;;  %v232_v34 = vmul.f32 %v402_v30, %v231_v32 }
 0x243   :  { %v224_v35 = vsub.f32 1.5, %v223_v33  ;;  %v233_v36 = vmul.f32 0.5, %v232_v34 }
 0x245   :  { %v225_v37 = vmul.f32 %v400_v28, %v224_v35  ;;  %v234_v38 = vsub.f32 1.5, %v233_v36 }
 0x247   :  { %v235_v41 = vmul.f32 %v402_v30, %v234_v38  ;;  %v229_v42 = vsel %vm228_vm10, %v400_v28, %v225_v37 }
 0x248   :  { %v240_v44 = vmul.f32 %v229_v42, %v216_v39 }
 0x249   :  { %v239_v46 = vsel %vm238_vm12, %v402_v30, %v235_v41  ;;  %v394_v30 = vld [vmem:[#allocation7 + $0x8] ss:$0 sm:$0xff] }
 0x24a   :  { %v244_v47 = vmul.f32 %v390_v40, %v240_v44  ;;  %v241_v48 = vmul.f32 %v239_v46, %v217_v43 }
 0x24c   :  { %v248_v49 = vadd.f32 %v391_v45, %v244_v47  ;;  %v245_v51 = vmul.f32 %v390_v40, %v241_v48 }
 0x24e   :  { %v250_v50 = vmax.f32 %v248_v49, 0.0  ;;  %v249_v52 = vadd.f32 %v391_v45, %v245_v51 }
 0x250   :  { %374 = vmatmul.msk.f32.vlgmr.msra.gmra.mxu2 %vm70_vm0, %v250_v50  ;;  %v251_v53 = vmax.f32 %v249_v52, 0.0 }
 0x258   :  { %375 = vmatmul.msk.f32.gmra.mxu2 %vm70_vm0, %v251_v53 }
 0x2d3   :  { %v282_v55 = vpop.f32.mrf.mxu2 }
 0x2d4   :  { %v283_v56 = vadd.f32 %v392_v54, %v282_v55 }
 0x2d6   :  { %v288_v57 = vsel %vm70_vm0, %v283_v56, 0.0  ;;  %v294_v58 = vmul.f32 %v283_v56, %v283_v56 }
 0x2d7   :  { %289 = vadd.xlane.f32.xlu2 %v288_v57 }
 0x2d8   :  { %v296_v59 = vsel %vm70_vm0, %v294_v58, 0.0 }
 0x2d9   :  { %297 = vadd.xlane.f32.xlu1 %v296_v59 }
 0x2db   :  { %v285_v60 = vpop.f32.mrf.mxu2 }
 0x2dc   :  { %v286_v61 = vadd.f32 %v392_v54, %v285_v60 }
 0x2de   :  { %v291_v62 = vsel %vm70_vm0, %v286_v61, 0.0  ;;  %v295_v63 = vmul.f32 %v286_v61, %v286_v61 }
 0x2df   :  { %292 = vadd.xlane.f32.xlu0 %v291_v62 }
 0x2e0   :  { %v299_v0 = vsel %vm70_vm0, %v295_v63, 0.0 }
 0x2e1   :  { %300 = vadd.xlane.f32.xlu2 %v299_v0 }
 0x34a   :  { %v290_v1 = vpop.xlane.xlu2 %289 }
 0x34b   :  { %v302_v2 = vmul.f32 0.03125, %v290_v1 }
 0x34c   :  { %v298_v3 = vpop.xlane.xlu1 %297 }
 0x34d   :  { %v306_v6 = vmul.f32 %v302_v2, %v302_v2  ;;  %v304_v7 = vmul.f32 0.03125, %v298_v3  ;;  %v310_v25 = vsub.f32 %v283_v56, %v302_v2 }
 0x34f   :  { %v308_v8 = vsub.f32 %v304_v7, %v306_v6 }
 0x351   :  { %v312_v9 = vadd.f32 1e-05, %v308_v8 }
 0x352   :  { %v293_v10 = vpop.xlane.xlu0 %292 }
 0x353   :  { %403 = vrsqrt.f32 %v312_v9  ;;  %v303_v11 = vmul.f32 0.03125, %v293_v10  ;;  %vm320_vm14 = vweird.f32 %v312_v9 }
 0x354   :  { %v301_v12 = vpop.xlane.xlu2 %300 }
 0x355   :  { %v307_v13 = vmul.f32 %v303_v11, %v303_v11  ;;  %v305_v14 = vmul.f32 0.03125, %v301_v12  ;;  %v311_v36 = vsub.f32 %v286_v61, %v303_v11 }
 0x357   :  { %v309_v15 = vsub.f32 %v305_v14, %v307_v13 }
 0x359   :  { %v404_v16 = vpop.eup %403  ;;  %v313_v17 = vadd.f32 1e-05, %v309_v15 }
 0x35a   :  { %v315_v18 = vmul.f32 %v404_v16, %v312_v9  ;;  %vm321_vm13 = vweird.f32 %v404_v16 }
 0x35b   :  { %405 = vrsqrt.f32 %v313_v17  ;;  %vm322_vm15 = vmor %vm320_vm14, %vm321_vm13  ;;  %vm330_vm2 = vweird.f32 %v313_v17 }
 0x35c   :  { %v316_v19 = vmul.f32 %v404_v16, %v315_v18 }
 0x35e   :  { %v317_v20 = vmul.f32 0.5, %v316_v19 }
 0x360   :  { %v318_v21 = vsub.f32 1.5, %v317_v20 }
 0x361   :  { %v406_v22 = vpop.eup %405 }
 0x362   :  { %v319_v23 = vmul.f32 %v404_v16, %v318_v21  ;;  %v325_v24 = vmul.f32 %v406_v22, %v313_v17  ;;  %vm331_vm1 = vweird.f32 %v406_v22 }
 0x363   :  { %vm332_vm3 = vmor %vm330_vm2, %vm331_vm1 }
 0x364   :  { %v323_v27 = vsel %vm322_vm15, %v404_v16, %v319_v23  ;;  %v326_v28 = vmul.f32 %v406_v22, %v325_v24 }
 0x365   :  { %v334_v29 = vmul.f32 %v323_v27, %v310_v25 }
 0x366   :  { %v327_v31 = vmul.f32 0.5, %v326_v28 }
 0x367   :  { %v338_v32 = vmul.f32 %v393_v26, %v334_v29 }
 0x368   :  { %v328_v33 = vsub.f32 1.5, %v327_v31 }
 0x369   :  { %v342_v34 = vadd.f32 %v394_v30, %v338_v32 }
 0x36a   :  { %v329_v35 = vmul.f32 %v406_v22, %v328_v33 }
 0x36b   :  { %v344_v37 = vmax.f32 %v342_v34, 0.0 }
 0x36c   :  { %v333_v38 = vsel %vm332_vm3, %v406_v22, %v329_v35 }
 0x36d   :  { %v335_v39 = vmul.f32 %v333_v38, %v311_v36  ;;  %v346_v40 = vadd.f32 %v344_v37, %v553_v4 }
 0x36f   :  { %v339_v41 = vmul.f32 %v393_v26, %v335_v39  ;;  %348 = vst.msk [vmem:[#allocation8] sm:$0xff] %vm70_vm0, %v346_v40 }
 0x371   :  { %v343_v42 = vadd.f32 %v394_v30, %v339_v41 }
 0x373   :  { %v345_v43 = vmax.f32 %v343_v42, 0.0 }
 0x375   :  { %v347_v44 = vadd.f32 %v345_v43, %v555_v5 }
 0x377   :  { %349 = vst.msk [vmem:[#allocation8 + $0x8] sm:$0xff] %vm70_vm0, %v347_v44 }
 0x378   :  { %362 = dma.vmem_to_hbm [thread:$0]  %s355_s27, 256, %s357_s30, [#allocation4], %s510_s20, %s510_s20, %s511_s21  }
 0x379   :  { %507 = dma.done.wait [#allocation4], 256  }
 0x37a   :  { %508 = vsyncadd [#allocation4], 4294967040 }
 0x37b   :  { %367 = vsyncpa [#allocation3], 1 }
 0x37c   :  { %368 = vsyncpa [#allocation6], 1 }
 0x37d   :  { %369 = vsyncpa [#allocation4], 1 }

</bundles_post_ra>
